<compile_context>
chip_gen: v5e
topology: v5e:2x2
jax: 0.10.0
libtpu: 0.0.40
codegen_flags: <defaults>
</compile_context>

<pallas_src>
import functools

import jax
import jax.numpy as jnp
from jax.experimental import pallas as pl
from jax.experimental.pallas import tpu as pltpu

DECAY_RATE = 0.1
REWARD_FACTOR = 0.1
_LOG_CLAMP = -100.0  # PyTorch BCELoss clamps log() at -100


def _time_aware_loss_kernel(pred_ref, true_ref, los_ref, out_ref,
                            acc_w_ref, acc_r_ref, *, inv_n):
    step = pl.program_id(0)

    # Zero the resident accumulators on the first grid step.
    @pl.when(step == 0)
    def _():
        acc_w_ref[...] = jnp.zeros_like(acc_w_ref)
        acc_r_ref[...] = jnp.zeros_like(acc_r_ref)

    p = pred_ref[...].astype(jnp.float32)
    y = true_ref[...].astype(jnp.float32)
    los = los_ref[...].astype(jnp.float32)

    # nn.BCELoss(reduction='none'): -(y*log(p) + (1-y)*log(1-p)), logs clamped
    # at -100 (PyTorch semantics for p in {0, 1}). Two-log form keeps soft-target
    # support identical to the reference module.
    log_p = jnp.maximum(jnp.log(p), _LOG_CLAMP)
    log_1mp = jnp.maximum(jnp.log(1.0 - p), _LOG_CLAMP)
    bce = -(y * log_p + (1.0 - y) * log_1mp)

    # los_weights = exp(-decay_rate * los_true)  (minus folded into the constant)
    los_w = jnp.exp(los * (-DECAY_RATE))

    # Pure elementwise (VPU) accumulation; no per-step cross-lane reduce.
    acc_w_ref[...] += bce * los_w
    acc_r_ref[...] += los * jnp.abs(y - p)

    # Finalize: one cross-lane reduce, one fused 1/n multiply, clamp, scalar store.
    @pl.when(step == pl.num_programs(0) - 1)
    def _():
        weighted_sum = jnp.sum(acc_w_ref[...])
        reward_sum = jnp.sum(acc_r_ref[...])
        loss = (weighted_sum - REWARD_FACTOR * reward_sum) * inv_n
        out_ref[0, 0] = jnp.maximum(loss, 0.0)  # torch.clamp(loss, min=0)


def _choose_block_rows(n_cols):
    # Target ~1 MiB of f32 per input per tile (256K elems), rounded to a
    # multiple of 8 sublanes. With double-buffering of 3 inputs plus the two
    # accumulators this stays well inside every generation's scoped VMEM.
    target_elems = 256 * 1024
    return max(8, (target_elems // max(n_cols, 1)) // 8 * 8)


def time_aware_loss(outcome_pred, outcome_true, los_true, *, block_rows=None):
    """Pallas TPU implementation of TimeAwareLoss.forward. Returns a scalar."""
    assert outcome_pred.shape == outcome_true.shape == los_true.shape
    assert outcome_pred.ndim == 2, "expected [batch, n] inputs"
    B, N = outcome_pred.shape

    # Mean divisor must be the GLOBAL element count (not the per-block count).
    inv_n = 1.0 / float(B * N)

    tb = block_rows if block_rows is not None else _choose_block_rows(N)
    if tb >= B:
        tb = B          # single row-tile covering the full batch dimension
        b_pad = B
    else:
        tb = max(8, (tb // 8) * 8)      # (8,128) sublane constraint
        b_pad = ((B + tb - 1) // tb) * tb

    def _prep(x):
        x = x.astype(jnp.float32)
        if b_pad != B:
            # Zero rows contribute exactly 0 to both accumulated sums.
            x = jnp.pad(x, ((0, b_pad - B), (0, 0)))
        return x

    pred = _prep(outcome_pred)
    true = _prep(outcome_true)
    los = _prep(los_true)

    grid = (b_pad // tb,)
    tile_spec = pl.BlockSpec((tb, N), lambda i: (i, 0))

    kernel = functools.partial(_time_aware_loss_kernel, inv_n=inv_n)

    out = pl.pallas_call(
        kernel,
        out_shape=jax.ShapeDtypeStruct((1, 1), jnp.float32),
        grid=grid,
        in_specs=[tile_spec, tile_spec, tile_spec],
        # Scalar reduction result lives in SMEM for the whole grid; written once.
        out_specs=pl.BlockSpec(memory_space=pltpu.MemorySpace.SMEM),
        scratch_shapes=[
            pltpu.VMEM((tb, N), jnp.float32),  # weighted-BCE partial sums
            pltpu.VMEM((tb, N), jnp.float32),  # reward-term partial sums
        ],
        compiler_params=pltpu.CompilerParams(
            dimension_semantics=("arbitrary",),   # reduction axis w/ resident acc
            vmem_limit_bytes=32 * 1024 * 1024,    # explicit, portable budget
        ),
    )(pred, true, los)
    return out[0, 0]


def _reference(outcome_pred, outcome_true, los_true):
    """Pure-JAX reference mirroring the PyTorch module."""
    p = outcome_pred.astype(jnp.float32)
    y = outcome_true.astype(jnp.float32)
    los = los_true.astype(jnp.float32)
    log_p = jnp.maximum(jnp.log(p), _LOG_CLAMP)
    log_1mp = jnp.maximum(jnp.log(1.0 - p), _LOG_CLAMP)
    bce = -(y * log_p + (1.0 - y) * log_1mp)
    los_w = jnp.exp(-DECAY_RATE * los)
    reward = jnp.mean(los * jnp.abs(y - p))
    loss = jnp.mean(bce * los_w) - REWARD_FACTOR * reward
    return jnp.maximum(loss, 0.0)


if __name__ == "__main__":
    key = jax.random.PRNGKey(0)
    k1, k2, k3 = jax.random.split(key, 3)

    # Small but non-trivial: B not a multiple of the row tile -> exercises the
    # zero-padding path, and block_rows=64 -> 4-step grid exercises the
    # resident-accumulator pipeline. los in [0, 5) keeps the loss strictly
    # positive so the full arithmetic path (global-n mean, reward, clamp) is
    # actually checked.
    B, N = 250, 128
    outcome_pred = jax.nn.sigmoid(jax.random.normal(k1, (B, N), jnp.float32))
    outcome_true = jax.random.bernoulli(k2, 0.5, (B, N)).astype(jnp.float32)
    los_true = jax.random.uniform(k3, (B, N), jnp.float32, minval=0.0, maxval=5.0)

    # Case 1: multi-step grid + row padding.
    loss = time_aware_loss(outcome_pred, outcome_true, los_true, block_rows=64)
    jax.block_until_ready(loss)
    ref = _reference(outcome_pred, outcome_true, los_true)
    assert jnp.allclose(loss, ref, rtol=1e-5, atol=1e-5), (loss, ref)

    # Case 2: default tile selection (single full-batch tile).
    loss2 = time_aware_loss(outcome_pred, outcome_true, los_true)
    jax.block_until_ready(loss2)
    assert jnp.allclose(loss2, ref, rtol=1e-5, atol=1e-5), (loss2, ref)

    print("KERNEL_OK")
</pallas_src>

<mosaic_0001>
module attributes {stable_mosaic.version = 11 : i64} {
  func.func @_time_aware_loss_kernel(%arg0: i32, %arg1: memref<64x128xf32, #tpu.memory_space<vmem>>, %arg2: memref<64x128xf32, #tpu.memory_space<vmem>>, %arg3: memref<64x128xf32, #tpu.memory_space<vmem>>, %arg4: memref<1x1xf32, #tpu.memory_space<smem>>, %arg5: memref<64x128xf32, #tpu.memory_space<vmem>>, %arg6: memref<64x128xf32, #tpu.memory_space<vmem>>) attributes {dimension_semantics = [#tpu.dimension_semantics<arbitrary>], iteration_bounds = array<i64: 4>, scalar_prefetch = 0 : i64, scratch_operands = 2 : i64, tpu.core_type = #tpu.core_type<tc>, window_params = [{transform_indices = @transform_0, window_bounds = array<i64: 64, 128>}, {transform_indices = @transform_1, window_bounds = array<i64: 64, 128>}, {transform_indices = @transform_2, window_bounds = array<i64: 64, 128>}, {transform_indices = @transform_3, window_bounds = array<i64: 1, 1>}]} {
    %c0_i32 = arith.constant 0 : i32
    %0 = arith.cmpi eq, %arg0, %c0_i32 : i32
    %1 = arith.extui %0 : i1 to i32
    %c0_i32_0 = arith.constant 0 : i32
    %2 = arith.cmpi ne, %1, %c0_i32_0 : i32
    scf.if %2 {
      %cst_20 = arith.constant 0.000000e+00 : f32
      %37 = vector.broadcast %cst_20 : f32 to vector<64x128xf32>
      %c0_21 = arith.constant 0 : index
      %c0_22 = arith.constant 0 : index
      %38 = vector.load %arg5[%c0_21, %c0_22] : memref<64x128xf32, #tpu.memory_space<vmem>>, vector<64x128xf32>
      tpu.vector_store %arg5[%c0_21, %c0_22], %37 {strides = array<i32>} : memref<64x128xf32, #tpu.memory_space<vmem>>, vector<64x128xf32>,
      %cst_23 = arith.constant 0.000000e+00 : f32
      %39 = vector.broadcast %cst_23 : f32 to vector<64x128xf32>
      %c0_24 = arith.constant 0 : index
      %c0_25 = arith.constant 0 : index
      %40 = vector.load %arg6[%c0_24, %c0_25] : memref<64x128xf32, #tpu.memory_space<vmem>>, vector<64x128xf32>
      tpu.vector_store %arg6[%c0_24, %c0_25], %39 {strides = array<i32>} : memref<64x128xf32, #tpu.memory_space<vmem>>, vector<64x128xf32>,
    } else {
    }
    %c0 = arith.constant 0 : index
    %c0_1 = arith.constant 0 : index
    %3 = vector.load %arg1[%c0, %c0_1] : memref<64x128xf32, #tpu.memory_space<vmem>>, vector<64x128xf32>
    %c0_2 = arith.constant 0 : index
    %c0_3 = arith.constant 0 : index
    %4 = vector.load %arg2[%c0_2, %c0_3] : memref<64x128xf32, #tpu.memory_space<vmem>>, vector<64x128xf32>
    %c0_4 = arith.constant 0 : index
    %c0_5 = arith.constant 0 : index
    %5 = vector.load %arg3[%c0_4, %c0_5] : memref<64x128xf32, #tpu.memory_space<vmem>>, vector<64x128xf32>
    %6 = math.log %3 : vector<64x128xf32>
    %cst = arith.constant -1.000000e+02 : f32
    %7 = vector.broadcast %cst : f32 to vector<64x128xf32>
    %8 = arith.maximumf %6, %7 : vector<64x128xf32>
    %cst_6 = arith.constant 1.000000e+00 : f32
    %9 = vector.broadcast %cst_6 : f32 to vector<64x128xf32>
    %10 = arith.subf %9, %3 : vector<64x128xf32>
    %11 = math.log %10 : vector<64x128xf32>
    %cst_7 = arith.constant -1.000000e+02 : f32
    %12 = vector.broadcast %cst_7 : f32 to vector<64x128xf32>
    %13 = arith.maximumf %11, %12 : vector<64x128xf32>
    %14 = arith.mulf %4, %8 : vector<64x128xf32>
    %cst_8 = arith.constant 1.000000e+00 : f32
    %15 = vector.broadcast %cst_8 : f32 to vector<64x128xf32>
    %16 = arith.subf %15, %4 : vector<64x128xf32>
    %17 = arith.mulf %16, %13 : vector<64x128xf32>
    %18 = arith.addf %14, %17 : vector<64x128xf32>
    %cst_9 = arith.constant 0.000000e+00 : f32
    %19 = vector.broadcast %cst_9 : f32 to vector<64x128xf32>
    %20 = arith.subf %19, %18 : vector<64x128xf32>
    %cst_10 = arith.constant -1.000000e-01 : f32
    %21 = vector.broadcast %cst_10 : f32 to vector<64x128xf32>
    %22 = arith.mulf %5, %21 : vector<64x128xf32>
    %23 = math.exp %22 : vector<64x128xf32>
    %c0_11 = arith.constant 0 : index
    %c0_12 = arith.constant 0 : index
    %24 = vector.load %arg5[%c0_11, %c0_12] : memref<64x128xf32, #tpu.memory_space<vmem>>, vector<64x128xf32>
    %25 = arith.mulf %20, %23 : vector<64x128xf32>
    %26 = arith.addf %24, %25 : vector<64x128xf32>
    %c0_13 = arith.constant 0 : index
    %c0_14 = arith.constant 0 : index
    %27 = vector.load %arg5[%c0_13, %c0_14] : memref<64x128xf32, #tpu.memory_space<vmem>>, vector<64x128xf32>
    tpu.vector_store %arg5[%c0_13, %c0_14], %26 {strides = array<i32>} : memref<64x128xf32, #tpu.memory_space<vmem>>, vector<64x128xf32>,
    %c0_15 = arith.constant 0 : index
    %c0_16 = arith.constant 0 : index
    %28 = vector.load %arg6[%c0_15, %c0_16] : memref<64x128xf32, #tpu.memory_space<vmem>>, vector<64x128xf32>
    %29 = arith.subf %4, %3 : vector<64x128xf32>
    %30 = math.absf %29 : vector<64x128xf32>
    %31 = arith.mulf %5, %30 : vector<64x128xf32>
    %32 = arith.addf %28, %31 : vector<64x128xf32>
    %c0_17 = arith.constant 0 : index
    %c0_18 = arith.constant 0 : index
    %33 = vector.load %arg6[%c0_17, %c0_18] : memref<64x128xf32, #tpu.memory_space<vmem>>, vector<64x128xf32>
    tpu.vector_store %arg6[%c0_17, %c0_18], %32 {strides = array<i32>} : memref<64x128xf32, #tpu.memory_space<vmem>>, vector<64x128xf32>,
    %c3_i32 = arith.constant 3 : i32
    %34 = arith.cmpi eq, %arg0, %c3_i32 : i32
    %35 = arith.extui %34 : i1 to i32
    %c0_i32_19 = arith.constant 0 : i32
    %36 = arith.cmpi ne, %35, %c0_i32_19 : i32
    scf.if %36 {
      %c0_20 = arith.constant 0 : index
      %c0_21 = arith.constant 0 : index
      %37 = vector.load %arg5[%c0_20, %c0_21] : memref<64x128xf32, #tpu.memory_space<vmem>>, vector<64x128xf32>
      %38 = vector.shape_cast %37 : vector<64x128xf32> to vector<1x64x128xf32>
      %cst_22 = arith.constant dense<0.000000e+00> : vector<1xf32>
      %39 = vector.multi_reduction <add>, %38, %cst_22 [1, 2] : vector<1x64x128xf32> to vector<1xf32>
      %40 = vector.shape_cast %39 : vector<1xf32> to vector<1x1x1xf32>
      %41 = vector.extract %40[0, 0, 0] : f32 from vector<1x1x1xf32>
      %c0_23 = arith.constant 0 : index
      %c0_24 = arith.constant 0 : index
      %42 = vector.load %arg6[%c0_23, %c0_24] : memref<64x128xf32, #tpu.memory_space<vmem>>, vector<64x128xf32>
      %43 = vector.shape_cast %42 : vector<64x128xf32> to vector<1x64x128xf32>
      %cst_25 = arith.constant dense<0.000000e+00> : vector<1xf32>
      %44 = vector.multi_reduction <add>, %43, %cst_25 [1, 2] : vector<1x64x128xf32> to vector<1xf32>
      %45 = vector.shape_cast %44 : vector<1xf32> to vector<1x1x1xf32>
      %46 = vector.extract %45[0, 0, 0] : f32 from vector<1x1x1xf32>
      %cst_26 = arith.constant 1.000000e-01 : f32
      %47 = arith.mulf %cst_26, %46 : f32
      %48 = arith.subf %41, %47 : f32
      %cst_27 = arith.constant 3.125000e-05 : f32
      %49 = arith.mulf %48, %cst_27 : f32
      %cst_28 = arith.constant 0.000000e+00 : f32
      %50 = arith.maximumf %49, %cst_28 : f32
      %c0_29 = arith.constant 0 : index
      %c0_30 = arith.constant 0 : index
      %51 = memref.load %arg4[%c0_29, %c0_30] : memref<1x1xf32, #tpu.memory_space<smem>>
      memref.store %50, %arg4[%c0_29, %c0_30] : memref<1x1xf32, #tpu.memory_space<smem>>
    } else {
    }
    return
  }
  func.func @transform_0(%arg0: i32) -> (i32, i32) {
    %c0_i32 = arith.constant 0 : i32
    %c0_i32_0 = arith.constant 0 : i32
    return %arg0, %c0_i32 : i32, i32
  }
  func.func @transform_1(%arg0: i32) -> (i32, i32) {
    %c0_i32 = arith.constant 0 : i32
    %c0_i32_0 = arith.constant 0 : i32
    return %arg0, %c0_i32 : i32, i32
  }
  func.func @transform_2(%arg0: i32) -> (i32, i32) {
    %c0_i32 = arith.constant 0 : i32
    %c0_i32_0 = arith.constant 0 : i32
    return %arg0, %c0_i32 : i32, i32
  }
  func.func @transform_3(%arg0: i32) -> (i32, i32) {
    %c0_i32 = arith.constant 0 : i32
    %c0_i32_0 = arith.constant 0 : i32
    %c0_i32_1 = arith.constant 0 : i32
    return %c0_i32, %c0_i32_0 : i32, i32
  }
}

</mosaic_0001>

<bundles_post_ra>
// kernel: tpu_custom_call.1
= control target key start
LH: loop header
LB: loop body
LE: loop exit
PB: predicated region body
PF: predicated region fallthrough
CT: control target
= control target key end

     0   :  { %8 = vsyncpa [#allocation5], 0  ;;  %s1285_s0 = inlined_call_operand.hbm [shape: f32[256,128], index: 0, kind: input, shape index: {}]   ;;  %s1286_s1 = inlined_call_operand.hbm [shape: f32[256,128], index: 1, kind: input, shape index: {}]   ;;  %s1287_s2 = inlined_call_operand.hbm [shape: f32[256,128], index: 2, kind: input, shape index: {}]   ;;  %s1288_s3 = inlined_call_operand.hbm [shape: f32[1,1], index: 3, kind: output, shape index: {}]  }
   0x1   :  { %10 = vsyncpa [#allocation5 + $0x1], 0 }
   0x2   :  { %11 = vsyncpa [#allocation8], 0 }
   0x3   :  { %13 = vsyncpa [#allocation8 + $0x1], 0 }
   0x4   :  { %14 = vsyncpa [#allocation6], 0  ;;  %s976_s12 = smov 0   ;;  %s978_s13 = smov 0  }
   0x5   :  { %s980_s14 = smov 0   ;;  %s982_s15 = smov 0  }
   0x6 LB: > { %s995_s16 = sadd.s32 4294967295, %s949_s15   ;;  %s998_s17 = sadd.s32 1, %s949_s15   ;;  %s949_s15 = sphi %s982_s15, %s1295_s15   ;;  %s945_s14 = sphi %s980_s14, %s1294_s14   ;;  %s941_s13 = sphi %s978_s13, %s1293_s13   ;;  %s937_s12 = sphi %s976_s12, %s1292_s12  }
   0x7   : > { %s24_s18 = ssub.s32 %s949_s15, %s998_s17  ;;  %s27_s19 = sadd.s32 1, %s945_s14 }
   0x8   : > { %p25_p0 = scmp.eq.s32.totalorder %s24_s18, 0  ;;  %p34_p1 = scmp.ne.s32.totalorder %s945_s14, %s941_s13 }
   0x9   : > { %p35_p2 = scmp.eq.s32.totalorder %s949_s15, 0  ;;  %p40_p3 = scmp.ne.s32.totalorder %s941_s13, %s937_s12 }
   0xa   : > { %s1008_s20 = scalar_select %p25_p0, %s945_s14, %s27_s19  }
   0xb   : > { %p36_p4 = por %p35_p2, %p34_p1  ;;  %p41_p5 = scmp.eq.s32.totalorder %s995_s16, 0 }
   0xc   : > { %p715_p6 = scmp.lt.s32.totalorder %s949_s15, 4  ;;  %s137_s22 = sand.u32 1, %s945_s14  }
   0xd   : > { %p1012_p7 = por %p41_p5, %p40_p3  ;;  %s1019_s23 = sshll.u32 %s137_s22, 6 }
   0xe   : > { %s1022_s24 = sshll.u32 %s949_s15, 6  ;;  %p1024_p8 = pnand %p715_p6, %p36_p4 }
   0xf   : > { %s159_s26 = sand.u32 1, %s949_s15   ;;  %s168_s29 = scalar_lea.hbm %s1286_s1, %s1022_s24 }
  0x10   : > { %s169_s30 = sshll.u32 %s168_s29, 4  ;;  %s163_s4 = scalar_lea.vmem [#allocation7], %s1019_s23  ;;  %s170_s30 = int_to_ptr.hbm [resolvable:$true] %s169_s30 }
  0x11   : > { %s171_s5 = sshll.u32 %s163_s4, 4  ;;  %s1034_s6 = scalar_lea.sflag [#allocation8], %s159_s26  ;;  %s172_s5 = int_to_ptr.vmem [resolvable:$true] %s171_s5 }
  0x12   : > { %s803_s7 = sshra.s32 %s170_s30, 4  ;;  %p807_p10 = pneg %p1024_p8  ;;  %s804_s7 = int_to_ptr.hbm [resolvable:$true] %s803_s7 }
  0x13   : > { %s805_s8 = scalar_lea.hbm %s804_s7, 64  ;;  %s810_s11 = scalar_lea.hbm %s1286_s1, 256 }
  0x14   : > { %p806_p9 = scmp.ne.s32.totalorder %s804_s7, %s805_s8  ;;  %p811_p13 = scmp.lt.s32.totalorder %s804_s7, %s1286_s1 }
  0x15   : > { %p812_p0 = scmp.lt.s32.totalorder %s810_s11, %s805_s8 }
  0x16   : > { %p808_p11 = pnand %p807_p10, %p806_p9 }
  0x17   : > { %p813_p1 = por %p812_p0, %p811_p13 }
  0x18   : > { %p809_p12 = pneg %p808_p11 }
  0x1a   : > { %p814_p2 = pnand %p813_p1, %p809_p12 }
  0x1c   : > { %817 = shalt.err (!%p814_p2)
}
  0x1d   : > { %s951_s19 = smov 128   ;;  %s952_s26 = smov 8  }
  0x1e   : > { %711 = dma.hbm_to_vmem [thread:$0]  (!%p1024_p8), %s170_s30, 1024, %s172_s5, %s1034_s6, %s951_s19, %s951_s19, %s952_s26  }
  0x1f   : > { %p678_p3 = scmp.ge.s32.totalorder %s949_s15, 1  ;;  %p201_p4 = scmp.lt.s32.totalorder %s949_s15, 5 }
  0x20   : > { %s146_s4 = scalar_lea.hbm %s1285_s0, %s1022_s24  ;;  %s141_s8 = scalar_lea.vmem [#allocation4], %s1019_s23 }
  0x21   : > { %p1055_p5 = pnand %p678_p3, %p201_p4  ;;  %s147_s7 = sshll.u32 %s146_s4, 4  ;;  %s148_s7 = int_to_ptr.hbm [resolvable:$true] %s147_s7 }
  0x22   : > { %s149_s9 = sshll.u32 %s141_s8, 4  ;;  %s138_s10 = scalar_lea.sflag [#allocation5], %s137_s22  ;;  %s150_s9 = int_to_ptr.vmem [resolvable:$true] %s149_s9 }
  0x23   : > { %s833_s11 = sshra.s32 %s148_s7, 4  ;;  %s840_s12 = scalar_lea.hbm %s1285_s0, 256  ;;  %s834_s11 = int_to_ptr.hbm [resolvable:$true] %s833_s11 }
  0x24   : > { %s835_s30 = scalar_lea.hbm %s834_s11, 64  ;;  %p841_p12 = scmp.lt.s32.totalorder %s834_s11, %s1285_s0 }
  0x25   : > { %p836_p6 = scmp.ne.s32.totalorder %s834_s11, %s835_s30  ;;  %p842_p13 = scmp.lt.s32.totalorder %s840_s12, %s835_s30 }
  0x27   : > { %p838_p9 = pnand %p836_p6, %p807_p10  ;;  %p843_p0 = por %p842_p13, %p841_p12 }
  0x29   : > { %p839_p11 = pneg %p838_p9 }
  0x2b   : > { %p844_p1 = pnand %p843_p0, %p839_p11 }
  0x2d   : > { %847 = shalt.err (!%p844_p1)
}
  0x2e   : > { %708 = dma.hbm_to_vmem [thread:$0]  (!%p1024_p8), %s148_s7, 1024, %s150_s9, %s138_s10, %s951_s19, %s951_s19, %s952_s26  }
  0x2f   : > { %s190_s4 = scalar_lea.hbm %s1287_s2, %s1022_s24  ;;  %s185_s15 = scalar_lea.vmem [#allocation9], %s1019_s23 }
  0x30   : > { %s191_s8 = sshll.u32 %s190_s4, 4  ;;  %s193_s11 = sshll.u32 %s185_s15, 4  ;;  %s192_s8 = int_to_ptr.hbm [resolvable:$true] %s191_s8  ;;  %s194_s11 = int_to_ptr.vmem [resolvable:$true] %s193_s11 }
  0x31   : > { %s863_s30 = sshra.s32 %s192_s8, 4  ;;  %s870_s7 = scalar_lea.hbm %s1287_s2, 256  ;;  %s864_s30 = int_to_ptr.hbm [resolvable:$true] %s863_s30 }
  0x32   : > { %s865_s5 = scalar_lea.hbm %s864_s30, 64  ;;  %p871_p6 = scmp.lt.s32.totalorder %s864_s30, %s1287_s2 }
  0x33   : > { %p866_p2 = scmp.ne.s32.totalorder %s864_s30, %s865_s5  ;;  %p872_p9 = scmp.lt.s32.totalorder %s870_s7, %s865_s5 }
  0x35   : > { %p868_p3 = pnand %p866_p2, %p807_p10  ;;  %p873_p11 = por %p872_p9, %p871_p6 }
  0x37   : > { %p869_p4 = pneg %p868_p3 }
  0x39   : > { %p874_p12 = pnand %p873_p11, %p869_p4 }
  0x3b   : > { %877 = shalt.err (!%p874_p12)
}
  0x3c   : > { %714 = dma.hbm_to_vmem [thread:$0]  (!%p1024_p8), %s192_s8, 1024, %s194_s11, %s1034_s6, %s951_s19, %s951_s19, %s952_s26  }
  0x3d   : > { %205 = sbr.rel (%p1055_p5) target bundleno = 360 (0x168), region = 32  ;;  %s207_s23 = sand.u32 (!%p1055_p5), 1, %s941_s13  }
  0x3e   : > { %s679_s24 = sshll.u32 (!%p1055_p5), %s207_s23, 6  ;;  %s208_s28 = scalar_lea.sflag (!%p1055_p5), [#allocation5], %s207_s23 }
  0x3f   : > { %s1103_s22 = scalar_lea.vmem (!%p1055_p5), [#allocation4], %s679_s24 }
  0x42   : > { %924 = dma.done.wait (%p1012_p7), %s208_s28, 1024  }
  0x43   : > { %926 = vsyncadd (%p1012_p7), %s208_s28, 4294966272  ;;  %s217_s25 = sand.u32 1, %s995_s16   ;;  %s1110_s6 = scalar_lea.vmem [#allocation7], %s679_s24 }
  0x44   : > { %s218_s29 = scalar_lea.sflag [#allocation8], %s217_s25 }
  0x45   : > { %928 = dma.done.wait (%p1012_p7), %s218_s29, 2048  }
  0x46   : > { %930 = vsyncadd (%p1012_p7), %s218_s29, 4294965248  ;;  %s1116_s19 = scalar_lea.vmem [#allocation9], %s679_s24  ;;  %p682_p8 = scmp.ne.s32.totalorder %s995_s16, 0 }
  0x48   : > { %266 = sbr.rel (%p682_p8) target bundleno = 94 (0x5e), region = 48 }
  0x4d   : > { %v953_v0 = vmov 0.0  }
  0x4e   : > { %267 = vst [vmem:[#allocation2 + $0x30] sm:$0xff] %v953_v0 }
  0x4f   : > { %268 = vst [vmem:[#allocation2] sm:$0xff] %v953_v0 }
  0x50   : > { %269 = vst [vmem:[#allocation2 + $0x18] sm:$0xff] %v953_v0 }
  0x51   : > { %270 = vst [vmem:[#allocation2 + $0x10] sm:$0xff] %v953_v0 }
  0x52   : > { %271 = vst [vmem:[#allocation2 + $0x8] sm:$0xff] %v953_v0 }
  0x53   : > { %272 = vst [vmem:[#allocation2 + $0x20] sm:$0xff] %v953_v0 }
  0x54   : > { %273 = vst [vmem:[#allocation2 + $0x28] sm:$0xff] %v953_v0 }
  0x55   : > { %274 = vst [vmem:[#allocation2 + $0x38] sm:$0xff] %v953_v0 }
  0x56   : > { %275 = vst [vmem:[#allocation3] sm:$0xff] %v953_v0 }
  0x57   : > { %276 = vst [vmem:[#allocation3 + $0x18] sm:$0xff] %v953_v0 }
  0x58   : > { %277 = vst [vmem:[#allocation3 + $0x10] sm:$0xff] %v953_v0 }
  0x59   : > { %278 = vst [vmem:[#allocation3 + $0x20] sm:$0xff] %v953_v0 }
  0x5a   : > { %279 = vst [vmem:[#allocation3 + $0x28] sm:$0xff] %v953_v0 }
  0x5b   : > { %280 = vst [vmem:[#allocation3 + $0x8] sm:$0xff] %v953_v0 }
  0x5c   : > { %281 = vst [vmem:[#allocation3 + $0x30] sm:$0xff] %v953_v0 }
  0x5d   : > { %282 = vst [vmem:[#allocation3 + $0x38] sm:$0xff] %v953_v0 }
  0x5e PF: > { %v1120_v1 = vld [vmem:[%s1103_s22] sm:$0xff]  ;;  %v1129_v5 = vld [vmem:[%s1103_s22 + $0x8] sm:$0xff]  ;;  %v1144_v12 = vld [vmem:[%s1103_s22 + $0x10] sm:$0xff]  ;;  %p683_p7 = scmp.ne.s32.totalorder %s995_s16, 3 }
  0x5f   : > { %v1123_v2 = vld [vmem:[%s1116_s19] sm:$0xff]  ;;  %755 = vlog2.f32 %v1120_v1  ;;  %v331_v3 = vsub.f32 1.0, %v1120_v1  ;;  %v1135_v7 = vld [vmem:[%s1116_s19 + $0x8] sm:$0xff]  ;;  %v332_v8 = vsub.f32 1.0, %v1129_v5  ;;  %v1147_v13 = vld [vmem:[%s1110_s6 + $0x10] sm:$0xff]  ;;  %v333_v15 = vsub.f32 1.0, %v1144_v12 }
  0x60   : > { %v403_v4 = vmul.f32 -0.1, %v1123_v2  ;;  %v1132_v6 = vld [vmem:[%s1110_s6] sm:$0xff]  ;;  %757 = vlog2.f32 %v1129_v5  ;;  %v1140_v10 = vld [vmem:[%s1110_s6 + $0x8] sm:$0xff]  ;;  %v404_v11 = vmul.f32 -0.1, %v1135_v7 }
  0x61   : > { %759 = vlog2.f32 %v331_v3  ;;  %v1150_v14 = vld [vmem:[%s1116_s19 + $0x10] sm:$0xff]  ;;  %v1155_v18 = vld [vmem:[%s1103_s22 + $0x18] sm:$0xff]  ;;  %v371_v19 = vsub.f32 1.0, %v1132_v6  ;;  %v372_v20 = vsub.f32 1.0, %v1140_v10  ;;  %v373_v21 = vsub.f32 1.0, %v1147_v13  ;;  %v1170_v28 = vld [vmem:[%s1103_s22 + $0x20] sm:$0xff] }
  0x62   : > { %v411_v9 = vmul.f32 1.442695, %v403_v4  ;;  %761 = vlog2.f32 %v332_v8  ;;  %v413_v16 = vmul.f32 1.442695, %v404_v11  ;;  %v405_v17 = vmul.f32 -0.1, %v1150_v14 }
  0x63   : > { %v1162_v22 = vld [vmem:[%s1110_s6 + $0x18] sm:$0xff]  ;;  %v334_v26 = vsub.f32 1.0, %v1155_v18  ;;  %v1174_v32 = vld [vmem:[%s1110_s6 + $0x20] sm:$0xff]  ;;  %v335_v34 = vsub.f32 1.0, %v1170_v28  ;;  %v1182_v39 = vld [vmem:[%s1103_s22 + $0x28] sm:$0xff]  ;;  %s954_s15 = smov (!%p683_p7), 0.0  }
  0x64   : > { %763 = vpow2.f32 %v411_v9  ;;  %v1165_v23 = vld [vmem:[%s1116_s19 + $0x18] sm:$0xff]  ;;  %v415_v25 = vmul.f32 1.442695, %v405_v17  ;;  %v374_v31 = vsub.f32 1.0, %v1162_v22  ;;  %v1177_v33 = vld [vmem:[%s1116_s19 + $0x20] sm:$0xff]  ;;  %v375_v38 = vsub.f32 1.0, %v1174_v32 }
  0x65   : > { %765 = vlog2.f32 %v1144_v12  ;;  %v756_v24 = vpop.eup %755  ;;  %v406_v27 = vmul.f32 -0.1, %v1165_v23  ;;  %v407_v43 = vmul.f32 -0.1, %v1177_v33  ;;  %v1187_v47 = vld [vmem:[%s1110_s6 + $0x28] sm:$0xff]  ;;  %v336_v49 = vsub.f32 1.0, %v1182_v39 }
  0x66   : > { %767 = vpow2.f32 %v413_v16  ;;  %v758_v29 = vpop.eup %757  ;;  %v308_v30 = vmul.f32 0.6931472, %v756_v24  ;;  %v1190_v48 = vld [vmem:[%s1116_s19 + $0x28] sm:$0xff]  ;;  %v1197_v58 = vld [vmem:[%s1103_s22 + $0x30] sm:$0xff]  ;;  %v376_v61 = vsub.f32 1.0, %v1187_v47 }
  0x67   : > { %769 = vlog2.f32 %v333_v15  ;;  %v760_v35 = vpop.eup %759  ;;  %v310_v36 = vmul.f32 0.6931472, %v758_v29  ;;  %v417_v37 = vmul.f32 1.442695, %v406_v27  ;;  %v419_v53 = vmul.f32 1.442695, %v407_v43 }
  0x68   : > { %771 = vpow2.f32 %v415_v25  ;;  %v762_v40 = vpop.eup %761  ;;  %v323_v41 = vmax.f32 %v308_v30, -100.0  ;;  %v340_v42 = vmul.f32 0.6931472, %v760_v35  ;;  %v408_v62 = vmul.f32 -0.1, %v1190_v48  ;;  %v1202_v8 = vld [vmem:[%s1110_s6 + $0x30] sm:$0xff] }
  0x69   : > { %773 = vlog2.f32 %v1155_v18  ;;  %v324_v45 = vmax.f32 %v310_v36, -100.0  ;;  %v342_v46 = vmul.f32 0.6931472, %v762_v40  ;;  %v337_v16 = vsub.f32 1.0, %v1197_v58  ;;  %v427_v35 = vld [vmem:[#allocation2 + $0x30] sm:$0xff]  ;;  %v428_v43 = vld [vmem:[#allocation2] sm:$0xff] }
  0x6a   : > { %v764_v44 = vpop.eup %763  ;;  %775 = vlog2.f32 %v334_v26  ;;  %v355_v51 = vmax.f32 %v340_v42, -100.0  ;;  %v363_v52 = vmul.f32 %v323_v41, %v1132_v6  ;;  %v421_v15 = vmul.f32 1.442695, %v408_v62 }
  0x6b   : > { %v766_v50 = vpop.eup %765  ;;  %777 = vpow2.f32 %v417_v37  ;;  %v356_v55 = vmax.f32 %v342_v46, -100.0  ;;  %v364_v56 = vmul.f32 %v324_v45, %v1140_v10  ;;  %v377_v30 = vsub.f32 1.0, %v1202_v8 }
  0x6c   : > { %v768_v54 = vpop.eup %767  ;;  %v312_v57 = vmul.f32 0.6931472, %v766_v50  ;;  %779 = vlog2.f32 %v1170_v28  ;;  %v379_v60 = vmul.f32 %v371_v19, %v355_v51 }
  0x6d   : > { %v770_v59 = vpop.eup %769  ;;  %781 = vlog2.f32 %v335_v34  ;;  %v380_v0 = vmul.f32 %v372_v20, %v356_v55  ;;  %v1213_v55 = vld [vmem:[%s1116_s19 + $0x30] sm:$0xff] }
  0x6e   : > { %v772_v63 = vpop.eup %771  ;;  %v325_v3 = vmax.f32 %v312_v57, -100.0  ;;  %v344_v4 = vmul.f32 0.6931472, %v770_v59  ;;  %783 = vpow2.f32 %v419_v53  ;;  %v387_v11 = vadd.f32 %v379_v60, %v363_v52 }
  0x6f   : > { %v774_v9 = vpop.eup %773  ;;  %785 = vlog2.f32 %v1182_v39  ;;  %v388_v19 = vadd.f32 %v380_v0, %v364_v56 }
  0x70   : > { %v776_v17 = vpop.eup %775  ;;  %v357_v24 = vmax.f32 %v344_v4, -100.0  ;;  %v365_v25 = vmul.f32 %v325_v3, %v1147_v13  ;;  %v314_v26 = vmul.f32 0.6931472, %v774_v9  ;;  %v395_v20 = vsub.f32 0.0, %v387_v11  ;;  %v1218_v3 = vld [vmem:[%s1103_s22 + $0x38] sm:$0xff] }
  0x71   : > { %v778_v27 = vpop.eup %777  ;;  %v346_v29 = vmul.f32 0.6931472, %v776_v17  ;;  %787 = vlog2.f32 %v336_v49  ;;  %v396_v36 = vsub.f32 0.0, %v388_v19  ;;  %v429_v9 = vld [vmem:[#allocation2 + $0x18] sm:$0xff]  ;;  %v409_v17 = vmul.f32 -0.1, %v1213_v55 }
  0x72   : > { %v780_v34 = vpop.eup %779  ;;  %v381_v37 = vmul.f32 %v373_v21, %v357_v24  ;;  %v326_v40 = vmax.f32 %v314_v26, -100.0  ;;  %789 = vpow2.f32 %v421_v15  ;;  %v435_v42 = vmul.f32 %v764_v44, %v395_v20  ;;  %v1229_v26 = vld [vmem:[%s1116_s19 + $0x38] sm:$0xff] }
  0x73   : > { %v782_v41 = vpop.eup %781  ;;  %v358_v45 = vmax.f32 %v346_v29, -100.0  ;;  %v316_v46 = vmul.f32 0.6931472, %v780_v34  ;;  %791 = vlog2.f32 %v1197_v58  ;;  %v436_v50 = vmul.f32 %v768_v54, %v396_v36  ;;  %v1221_v54 = vld [vmem:[%s1110_s6 + $0x38] sm:$0xff] }
  0x74   : > { %v784_v49 = vpop.eup %783  ;;  %v389_v51 = vadd.f32 %v381_v37, %v365_v25  ;;  %v366_v52 = vmul.f32 %v326_v40, %v1162_v22  ;;  %v348_v53 = vmul.f32 0.6931472, %v782_v41  ;;  %v443_v56 = vadd.f32 %v435_v42, %v427_v35  ;;  %v430_v40 = vld [vmem:[#allocation2 + $0x10] sm:$0xff] }
  0x75   : > { %v786_v21 = vpop.eup %785  ;;  %v382_v44 = vmul.f32 %v374_v31, %v358_v45  ;;  %v327_v57 = vmax.f32 %v316_v46, -100.0  ;;  %793 = vlog2.f32 %v337_v16  ;;  %v444_v59 = vadd.f32 %v436_v50, %v428_v43 }
  0x76   : > { %v397_v60 = vsub.f32 0.0, %v389_v51  ;;  %v359_v62 = vmax.f32 %v348_v53, -100.0  ;;  %v318_v0 = vmul.f32 0.6931472, %v786_v21  ;;  %451 = vst [vmem:[#allocation2 + $0x30] sm:$0xff] %v443_v56  ;;  %795 = vlog2.f32 %v1218_v3  ;;  %v431_v56 = vld [vmem:[#allocation2 + $0x8] sm:$0xff] }
  0x77   : > { %v788_v4 = vpop.eup %787  ;;  %v390_v11 = vadd.f32 %v382_v44, %v366_v52  ;;  %v367_v15 = vmul.f32 %v327_v57, %v1174_v32  ;;  %452 = vst [vmem:[#allocation2] sm:$0xff] %v444_v59  ;;  %v423_v34 = vmul.f32 1.442695, %v409_v17  ;;  %v338_v35 = vsub.f32 1.0, %v1218_v3 }
  0x78   : > { %v790_v31 = vpop.eup %789  ;;  %v437_v16 = vmul.f32 %v772_v63, %v397_v60  ;;  %v383_v19 = vmul.f32 %v375_v38, %v359_v62  ;;  %v328_v24 = vmax.f32 %v318_v0, -100.0  ;;  %v350_v25 = vmul.f32 0.6931472, %v788_v4 }
  0x79   : > { %v792_v20 = vpop.eup %791  ;;  %v398_v29 = vsub.f32 0.0, %v390_v11  ;;  %v378_v36 = vsub.f32 1.0, %v1221_v54  ;;  %797 = vpow2.f32 %v423_v34  ;;  %v410_v46 = vmul.f32 -0.1, %v1229_v26 }
  0x7a   : > { %v445_v37 = vadd.f32 %v437_v16, %v429_v9  ;;  %v391_v41 = vadd.f32 %v383_v19, %v367_v15  ;;  %v360_v42 = vmax.f32 %v350_v25, -100.0  ;;  %v368_v63 = vmul.f32 %v328_v24, %v1187_v47  ;;  %v459_v19 = vld [vmem:[#allocation3] sm:$0xff] }
  0x7b   : > { %v794_v43 = vpop.eup %793  ;;  %v438_v45 = vmul.f32 %v778_v27, %v398_v29  ;;  %v320_v38 = vmul.f32 0.6931472, %v792_v20  ;;  %799 = vlog2.f32 %v338_v35  ;;  %v425_v57 = vmul.f32 1.442695, %v410_v46  ;;  %v462_v46 = vld [vmem:[#allocation3 + $0x20] sm:$0xff] }
  0x7c   : > { %453 = vst [vmem:[#allocation2 + $0x18] sm:$0xff] %v445_v37  ;;  %v399_v50 = vsub.f32 0.0, %v391_v41  ;;  %v384_v51 = vmul.f32 %v376_v61, %v360_v42  ;;  %v352_v52 = vmul.f32 0.6931472, %v794_v43  ;;  %v796_v53 = vpop.eup %795  ;;  %v467_v59 = vsub.f32 %v1132_v6, %v1120_v1  ;;  %v432_v6 = vld [vmem:[#allocation2 + $0x20] sm:$0xff]  ;;  %v433_v43 = vld [vmem:[#allocation2 + $0x28] sm:$0xff] }
  0x7d   : > { %v446_v21 = vadd.f32 %v438_v45, %v430_v40  ;;  %v329_v44 = vmax.f32 %v320_v38, -100.0  ;;  %v322_v0 = vmul.f32 0.6931472, %v796_v53  ;;  %801 = vpow2.f32 %v425_v57  ;;  %v464_v57 = vld [vmem:[#allocation3 + $0x8] sm:$0xff] }
  0x7e   : > { %v439_v27 = vmul.f32 %v784_v49, %v399_v50  ;;  %v392_v60 = vadd.f32 %v384_v51, %v368_v63  ;;  %v361_v62 = vmax.f32 %v352_v52, -100.0  ;;  %v475_v9 = vand.u32 2147483647, %v467_v59  ;;  %v463_v50 = vld [vmem:[#allocation3 + $0x28] sm:$0xff] }
  0x7f   : > { %454 = vst [vmem:[#allocation2 + $0x10] sm:$0xff] %v446_v21  ;;  %v369_v4 = vmul.f32 %v329_v44, %v1202_v8  ;;  %v468_v61 = vsub.f32 %v1140_v10, %v1129_v5  ;;  %v330_v16 = vmax.f32 %v322_v0, -100.0  ;;  %v798_v1 = vpop.eup %797  ;;  %v469_v25 = vsub.f32 %v1147_v13, %v1144_v12  ;;  %v461_v13 = vld [vmem:[#allocation3 + $0x10] sm:$0xff] }
  0x80   : > { %v447_v11 = vadd.f32 %v439_v27, %v431_v56  ;;  %v400_v15 = vsub.f32 0.0, %v392_v60  ;;  %v385_v17 = vmul.f32 %v377_v30, %v361_v62  ;;  %v483_v49 = vmul.f32 %v475_v9, %v1123_v2  ;;  %v460_v30 = vld [vmem:[#allocation3 + $0x18] sm:$0xff]  ;;  %v465_v27 = vld [vmem:[#allocation3 + $0x30] sm:$0xff] }
  0x81   : > { %v476_v24 = vand.u32 2147483647, %v468_v61  ;;  %v470_v20 = vsub.f32 %v1162_v22, %v1155_v18  ;;  %v800_v29 = vpop.eup %799  ;;  %v370_v34 = vmul.f32 %v330_v16, %v1221_v54  ;;  %v471_v35 = vsub.f32 %v1174_v32, %v1170_v28 }
  0x82   : > { %455 = vst [vmem:[#allocation2 + $0x8] sm:$0xff] %v447_v11  ;;  %v440_v5 = vmul.f32 %v790_v31, %v400_v15  ;;  %v393_v10 = vadd.f32 %v385_v17, %v369_v4  ;;  %v354_v37 = vmul.f32 0.6931472, %v800_v29  ;;  %v491_v40 = vadd.f32 %v483_v49, %v459_v19 }
  0x83   : > { %v484_v2 = vmul.f32 %v476_v24, %v1135_v7  ;;  %v477_v41 = vand.u32 2147483647, %v469_v25  ;;  %v478_v63 = vand.u32 2147483647, %v470_v20  ;;  %v479_v18 = vand.u32 2147483647, %v471_v35  ;;  %v802_v22 = vpop.eup %801 }
  0x84   : > { %v448_v42 = vadd.f32 %v440_v5, %v432_v6  ;;  %v401_v12 = vsub.f32 0.0, %v393_v10  ;;  %v362_v31 = vmax.f32 %v354_v37, -100.0  ;;  %499 = vst [vmem:[#allocation3] sm:$0xff] %v491_v40  ;;  %v472_v28 = vsub.f32 %v1187_v47, %v1182_v39 }
  0x85   : > { %v492_v45 = vadd.f32 %v484_v2, %v460_v30  ;;  %v485_v38 = vmul.f32 %v477_v41, %v1150_v14  ;;  %v486_v32 = vmul.f32 %v478_v63, %v1165_v23  ;;  %v487_v51 = vmul.f32 %v479_v18, %v1177_v33 }
  0x86   : > { %456 = vst [vmem:[#allocation2 + $0x20] sm:$0xff] %v448_v42  ;;  %v441_v7 = vmul.f32 %v798_v1, %v401_v12  ;;  %v473_v52 = vsub.f32 %v1202_v8, %v1197_v58  ;;  %v386_v53 = vmul.f32 %v378_v36, %v362_v31  ;;  %v480_v14 = vand.u32 2147483647, %v472_v28  ;;  %v466_v36 = vld [vmem:[#allocation3 + $0x38] sm:$0xff] }
  0x87   : > { %500 = vst [vmem:[#allocation3 + $0x18] sm:$0xff] %v492_v45  ;;  %v493_v21 = vadd.f32 %v485_v38, %v461_v13  ;;  %v474_v56 = vsub.f32 %v1221_v54, %v1218_v3  ;;  %v494_v39 = vadd.f32 %v486_v32, %v462_v46  ;;  %v495_v47 = vadd.f32 %v487_v51, %v463_v50  ;;  %v434_v54 = vld [vmem:[#allocation2 + $0x38] sm:$0xff] }
  0x88   : > { %v449_v44 = vadd.f32 %v441_v7, %v433_v43  ;;  %v481_v59 = vand.u32 2147483647, %v473_v52  ;;  %v394_v23 = vadd.f32 %v386_v53, %v370_v34  ;;  %v488_v33 = vmul.f32 %v480_v14, %v1190_v48 }
  0x89   : > { %501 = vst [vmem:[#allocation3 + $0x10] sm:$0xff] %v493_v21  ;;  %v482_v58 = vand.u32 2147483647, %v474_v56 }
  0x8a   : > { %457 = vst [vmem:[#allocation2 + $0x28] sm:$0xff] %v449_v44  ;;  %v489_v8 = vmul.f32 %v481_v59, %v1213_v55  ;;  %v402_v60 = vsub.f32 0.0, %v394_v23  ;;  %v496_v62 = vadd.f32 %v488_v33, %v464_v57 }
  0x8b   : > { %502 = vst [vmem:[#allocation3 + $0x20] sm:$0xff] %v494_v39  ;;  %v490_v3 = vmul.f32 %v482_v58, %v1229_v26 }
  0x8c   : > { %503 = vst [vmem:[#allocation3 + $0x28] sm:$0xff] %v495_v47  ;;  %v497_v0 = vadd.f32 %v489_v8, %v465_v27  ;;  %v442_v4 = vmul.f32 %v802_v22, %v402_v60  ;;  %510 = sbr.rel (%p683_p7) target bundleno = 354 (0x162), region = 52 }
  0x8d   : > { %504 = vst [vmem:[#allocation3 + $0x8] sm:$0xff] %v496_v62  ;;  %v498_v9 = vadd.f32 %v490_v3, %v466_v36 }
  0x8e   : > { %505 = vst [vmem:[#allocation3 + $0x30] sm:$0xff] %v497_v0  ;;  %v450_v61 = vadd.f32 %v442_v4, %v434_v54 }
  0x8f   : > { %506 = vst [vmem:[#allocation3 + $0x38] sm:$0xff] %v498_v9 }
  0x90   : > { %458 = vst [vmem:[#allocation2 + $0x38] sm:$0xff] %v450_v61 }
  0x91   : > { %v511_v48 = vld [vmem:[#allocation2 + $0x30] sm:$0xff]  ;;  %v512_v55 = vld [vmem:[#allocation2] sm:$0xff]  ;;  %v513_v11 = vld [vmem:[#allocation2 + $0x18] sm:$0xff] }
  0x92   : > { %v519_v15 = vadd.f32 %v512_v55, %v511_v48  ;;  %v514_v17 = vld [vmem:[#allocation2 + $0x10] sm:$0xff]  ;;  %v535_v16 = vld [vmem:[#allocation3] sm:$0xff]  ;;  %v536_v19 = vld [vmem:[#allocation3 + $0x18] sm:$0xff] }
  0x93   : > { %v537_v1 = vld [vmem:[#allocation3 + $0x10] sm:$0xff]  ;;  %v515_v6 = vld [vmem:[#allocation2 + $0x8] sm:$0xff]  ;;  %v543_v49 = vadd.f32 %v536_v19, %v535_v16  ;;  %v538_v25 = vld [vmem:[#allocation3 + $0x20] sm:$0xff] }
  0x94   : > { %v520_v26 = vadd.f32 %v519_v15, %v513_v11  ;;  %v516_v20 = vld [vmem:[#allocation2 + $0x20] sm:$0xff]  ;;  %v539_v10 = vld [vmem:[#allocation3 + $0x28] sm:$0xff] }
  0x95   : > { %v544_v29 = vadd.f32 %v543_v49, %v537_v1  ;;  %v517_v34 = vld [vmem:[#allocation2 + $0x28] sm:$0xff]  ;;  %v541_v42 = vld [vmem:[#allocation3 + $0x30] sm:$0xff] }
  0x96   : > { %v521_v24 = vadd.f32 %v520_v26, %v514_v17  ;;  %v540_v37 = vld [vmem:[#allocation3 + $0x8] sm:$0xff]  ;;  %v542_v18 = vld [vmem:[#allocation3 + $0x38] sm:$0xff] }
  0x97   : > { %v545_v30 = vadd.f32 %v544_v29, %v538_v25  ;;  %v518_v40 = vld [vmem:[#allocation2 + $0x38] sm:$0xff] }
  0x98   : > { %v522_v5 = vadd.f32 %v521_v24, %v515_v6 }
  0x99   : > { %v546_v2 = vadd.f32 %v545_v30, %v539_v10 }
  0x9a   : > { %v523_v35 = vadd.f32 %v522_v5, %v516_v20 }
  0x9b   : > { %v547_v12 = vadd.f32 %v546_v2, %v540_v37 }
  0x9c   : > { %v524_v41 = vadd.f32 %v523_v35, %v517_v34 }
  0x9d   : > { %v548_v63 = vadd.f32 %v547_v12, %v541_v42 }
  0x9e   : > { %v525_v13 = vadd.f32 %v524_v41, %v518_v40 }
  0x9f   : > { %v549_v22 = vadd.f32 %v548_v63, %v542_v18 }
  0xa0   : > { %526 = vadd.xlane.f32.xlu0 %v525_v13 }
  0xa8   : > { %550 = vadd.xlane.f32.xlu0 %v549_v22 }
 0x113   : > { %v527_v43 = vpop.xlane.xlu0 %526 }
 0x114   : > { %v528_v31 = vrot.slane %v527_v43, 4 }
 0x116   : > { %v529_v45 = vadd.f32 %v528_v31, %v527_v43 }
 0x118   : > { %v530_v38 = vrot.slane %v529_v45, 2 }
 0x11a   : > { %v531_v46 = vadd.f32 %v530_v38, %v529_v45 }
 0x11b   : > { %v551_v50 = vpop.xlane.xlu0 %550 }
 0x11c   : > { %v552_v28 = vrot.slane %v551_v50, 4  ;;  %v532_v7 = vrot.slane %v531_v46, 1 }
 0x11e   : > { %v553_v32 = vadd.f32 %v552_v28, %v551_v50  ;;  %v533_v51 = vadd.f32 %v532_v7, %v531_v46 }
 0x120   : > { %v554_v52 = vrot.slane %v553_v32, 2  ;;  %691 = vpush %v533_v51 }
 0x122   : > { %v555_v53 = vadd.f32 %v554_v52, %v553_v32 }
 0x124   : > { %v556_v21 = vrot.slane %v555_v53, 1 }
 0x126   : > { %v557_v14 = vadd.f32 %v556_v21, %v555_v53 }
 0x128   : > { %693 = vpush %v557_v14 }
 0x151   : > { %s692_s21 = spop %691 }
 0x159   : > { %s694_s26 = spop %693 }
 0x15a   : > { %s559_s27 = smul.f32 0.1, %s694_s26 }
 0x15c   : > { %s560_s4 = ssub.f32 %s692_s21, %s559_s27 }
 0x15e   : > { %s561_s8 = smul.f32 3.125e-05, %s560_s4 }
 0x160   : > { %s562_s11 = smax.f32 %s954_s15, %s561_s8 }
 0x161   : > { %564 = sst [smem:[#allocation10]] %s562_s11 }
 0x162 PF: > { %p716_p10 = scmp.eq.s32.totalorder %s995_s16, 3  ;;  %s571_s12 = sshll.u32 %s1288_s3, 4  ;;  %s572_s12 = int_to_ptr.hbm [resolvable:$true] %s571_s12 }
 0x163   : > { %s955_s18 = smov [#allocation10]  }
 0x164   : > { %702 = dma.smem_to_hbm (%p716_p10), %s955_s18, 16, %s572_s12, [#allocation6]  }
 0x165   : > { %932 = dma.done.wait (%p716_p10), [#allocation6], 16  }
 0x166   : > { %934 = vsyncadd (%p716_p10), [#allocation6], 4294967280 }
 0x167   : > { %580 = sfence }
 0x168 PF: > { %p17_p5 = scmp.ge.s32.totalorder %s998_s17, 6   ;;  %s1292_s12 = smov %s941_s13 }
 0x169   : > { %s1293_s13 = smov %s945_s14  ;;  %s1294_s14 = smov %s1008_s20 }
 0x16a   : > { %s1295_s15 = smov %s998_s17  ;;  %19 = sbr.rel (!%p17_p5) target bundleno = 6 (0x6), region = 102 }
 0x16f   :  { %586 = vsyncpa [#allocation5], 1 }
 0x170   :  { %588 = vsyncpa [#allocation5 + $0x1], 1 }
 0x171   :  { %589 = vsyncpa [#allocation8], 1 }
 0x172   :  { %591 = vsyncpa [#allocation8 + $0x1], 1 }
 0x173   :  { %592 = vsyncpa [#allocation6], 1 }
 0x174   :  { %594 = vsyncpa [#allocation6 + $0x1], 1 }

</bundles_post_ra>
